<compile_context>
chip_gen: v5e
topology: v5e:2x2
jax: 0.10.0
libtpu: 0.0.40
codegen_flags: <defaults>
</compile_context>

<pallas_src>
import functools

import jax
import jax.numpy as jnp
import numpy as np
from jax.experimental import pallas as pl
from jax.experimental.pallas import tpu as pltpu


def _round_up(x, m):
    return ((x + m - 1) // m) * m


def _cdiv(a, b):
    return -(-a // b)


def root_integ_kernel(s_ref, y_ref, za_ref, zh_ref, par_ref, kern_ref, out_ref,
                      *, sub_no, fold, T_hist, halo):
    R, Tg = s_ref.shape                      # R = fold*sub_no rows, Tg time cols / segment
    W = Tg + halo

    # Consolidated small params: [C_fold | theta_syn | W_sub | V_o] as (R, R+3)
    par = par_ref[...]
    theta = par[:, R:R + 1]                  # (R, 1)
    wsub = par[:, R + 1:R + 2]               # (R, 1)
    vo = par[:, R + 2:R + 3]                 # (R, 1)
    kern = kern_ref[...]                     # (R, halo) lane-dense flipped taps

    # Per-fold-group halo: group g < fold-1 continues into group g+1 of this
    # block (rows sub_no..R of za); the last group continues into group 0 of
    # block i+1, which arrives as the small (R, halo) head `zh_ref`.
    za = za_ref[...]                                               # (R, Tg)
    if fold > 1:
        halo_slab = jnp.concatenate(
            [za[sub_no:, :halo], zh_ref[:sub_no, :]], axis=0)      # (R, halo)
    else:
        halo_slab = zh_ref[:sub_no, :]
    z_ext = jnp.concatenate([za, halo_slab], axis=1)               # (R, W)

    y = y_ref[...]                                                 # (R, Tg)

    # Folded C_den contraction on the VPU: R broadcast-scaled-row madds.
    # C_fold = kron(I_fold, C_den) is block diagonal, so cross-group terms are 0.
    raw = jnp.zeros((R, Tg), jnp.float32)
    zc = jnp.zeros((R, W), jnp.float32)
    for r in range(R):                        # static; R <= 8 whenever sub_no <= 8
        cr = par[:, r:r + 1]                  # (R, 1) column r of C_fold
        raw = raw + cr * y[r:r + 1, :]
        zc = zc + cr * z_ext[r:r + 1, :]

    # Grouped "valid" correlation along time:
    #   filt[s, t] = sum_k zc[s, t + k] * kern_flip[s, k]
    # as XLU lane rolls (co-issue with the VPU) + VPU madds.  Roll wraparound
    # only touches columns >= Tg, which are sliced off below.
    # TODO(synk): for T_hist > ~32 switch this static unroll to a bounded
    # lax.fori_loop (unroll=8) with a dynamic pl.ds lane slice to cap live
    # ranges / instruction footprint.  Low priority at the typical T_hist.
    filt = jnp.zeros((R, W), jnp.float32)
    for k in range(T_hist):
        shifted = zc if k == 0 else pltpu.roll(zc, shift=W - k, axis=1)
        filt = filt + shifted * kern[:, k:k + 1]

    x_in = s_ref[...] + theta + filt[:, :Tg] + raw
    # sigmoid via the EUP (exp + approx reciprocal) to keep the VPU free.
    sig = pl.reciprocal(1.0 + jnp.exp(-x_in), approx=True)
    out_ref[...] = (sig * wsub + vo).astype(out_ref.dtype)


def root_integ_forward(S_conv, Y_ancest, Z_ancest, C_den, params, T_hist,
                       block_t=8192):
    T_data, sub_no = S_conv.shape
    f32 = jnp.float32

    # ---- build the (flipped) ancestor spike kernel from parameters ----------
    t = jnp.arange(T_hist, dtype=f32)[None, :] - params["delta_spike"][:, None]
    t = jnp.maximum(t, 0.0)                                      # (sub_no, T_hist)
    tau = jnp.exp(params["tau_spike"])                           # (syn_basis_no,)
    t_tau = t[:, None, :] / tau[None, :, None]
    ancest_kern = jnp.sum(t_tau * jnp.exp(-t_tau) * params["K_spike"][:, :, None],
                          axis=1)
    kern_flip = ancest_kern[:, ::-1]                             # (sub_no, T_hist)

    # ---- tiling: fold consecutive time segments into the 8 sublanes ---------
    fold = max(1, 8 // sub_no)               # rows R = fold*sub_no (dense sublanes)
    R = fold * sub_no
    halo = _round_up(T_hist, 128)            # lane-aligned history halo, divides Tg
    Tg = min(_round_up(min(block_t, 32768), halo),     # VMEM cap (v7x: 64 MiB/TC)
             _round_up(_cdiv(T_data, fold), halo))
    Tg = max(Tg, halo)
    if _cdiv(T_data, fold * Tg) < 2 and T_data > 2 * fold * halo:
        # keep >= 2 grid steps so the "parallel" axis can shard across megacore
        Tg = max(halo, _round_up(_cdiv(T_data, 2 * fold), halo))
    nb = _cdiv(T_data, fold * Tg)

    # ---- folded, lane-dense HBM layout (no zero sublane padding in HBM) -----
    # TODO(synk): these transposes/pads are full HBM passes done by XLA before
    # the kernel; if the producer can emit time-major / pre-folded data they
    # disappear entirely.
    def fold_tm(x_tm, n_blk):
        # (n_blk*fold*Tg, sub_no) time-major -> (R, n_blk*Tg) folded
        return (x_tm.reshape(n_blk, fold, Tg, sub_no)
                .transpose(1, 3, 0, 2)
                .reshape(R, n_blk * Tg))

    L = nb * fold * Tg
    S_f = fold_tm(jnp.zeros((L, sub_no), f32).at[:T_data].set(S_conv.astype(f32)), nb)
    Y_f = fold_tm(jnp.zeros((L, sub_no), f32).at[:T_data].set(Y_ancest.astype(f32)), nb)
    # Z gets T_hist zeros of history in front plus one trailing all-zero block
    # so the cross-block halo of the last grid step always exists.
    Lz = (nb + 1) * fold * Tg
    Z_f = fold_tm(jnp.zeros((Lz, sub_no), f32)
                  .at[T_hist:T_hist + T_data].set(Z_ancest.astype(f32)), nb + 1)

    # consolidated small params: [C_fold | theta_syn | W_sub | V_o]
    C_fold = jnp.kron(jnp.eye(fold, dtype=f32), C_den.astype(f32))    # (R, R)
    par = jnp.concatenate(
        [C_fold,
         jnp.tile(params["theta_syn"].astype(f32), fold)[:, None],
         jnp.tile(params["W_sub"].astype(f32), fold)[:, None],
         jnp.full((R, 1), params["V_o"][0], f32)], axis=1)            # (R, R+3)

    # lane-dense correlation taps, one row per folded subunit
    kern_cols = jnp.zeros((R, halo), f32).at[:, :T_hist].set(
        jnp.tile(kern_flip.astype(f32), (fold, 1)))

    kern_fn = functools.partial(root_integ_kernel, sub_no=sub_no, fold=fold,
                                T_hist=T_hist, halo=halo)

    blk = Tg // halo                         # Tg is a multiple of halo by construction
    out_f = pl.pallas_call(
        kern_fn,
        out_shape=jax.ShapeDtypeStruct((R, nb * Tg), f32),
        grid=(nb,),
        in_specs=[
            pl.BlockSpec((R, Tg), lambda i: (0, i)),                  # S (folded)
            pl.BlockSpec((R, Tg), lambda i: (0, i)),                  # Y (folded)
            pl.BlockSpec((R, Tg), lambda i: (0, i)),                  # Z block i
            pl.BlockSpec((R, halo), lambda i: (0, (i + 1) * blk)),    # Z halo: head of block i+1
            pl.BlockSpec(memory_space=pltpu.MemorySpace.VMEM),        # params matrix
            pl.BlockSpec(memory_space=pltpu.MemorySpace.VMEM),        # kernel taps
        ],
        out_specs=pl.BlockSpec((R, Tg), lambda i: (0, i)),
        compiler_params=pltpu.CompilerParams(
            dimension_semantics=("parallel",),
            vmem_limit_bytes=40 * 1024 * 1024),
    )(S_f, Y_f, Z_f, Z_f, par, kern_cols)

    # un-fold back to (T_data, sub_no)
    out_tm = (out_f.reshape(fold, sub_no, nb, Tg)
              .transpose(2, 0, 3, 1)
              .reshape(nb * fold * Tg, sub_no))
    return out_tm[:T_data]


def reference_numpy(S_conv, Y_ancest, Z_ancest, C_den, params, T_hist):
    """Direct port of the torch forward loop, for verification."""
    S = np.asarray(S_conv, np.float32)
    Y = np.asarray(Y_ancest, np.float32)
    Z = np.asarray(Z_ancest, np.float32)
    C = np.asarray(C_den, np.float32)
    sub_no = C.shape[0]
    T_data = S.shape[0]
    B = np.asarray(params["K_spike"]).shape[1]

    kern = np.zeros((sub_no, T_hist), np.float32)
    for s in range(sub_no):
        tt0 = np.arange(T_hist, dtype=np.float32) - float(params["delta_spike"][s])
        tt0[tt0 < 0.0] = 0.0
        for b in range(B):
            tau = np.exp(float(params["tau_spike"][b]))
            tt = tt0 / tau
            kern[s] += tt * np.exp(-tt) * float(params["K_spike"][s, b])
    kern_flip = kern[:, ::-1]

    Z_pad = np.zeros((T_data + T_hist, sub_no), np.float32)
    Z_pad[-T_data:] = Z

    out = np.zeros((T_data, sub_no), np.float32)
    for t in range(T_data):
        spike_ancest = C @ Z_pad[t:t + T_hist].T                    # (sub_no, T_hist)
        raw_ancest = C @ Y[t]                                       # (sub_no,)
        filtered = np.sum(spike_ancest * kern_flip, axis=1)         # grouped conv1d
        x_in = S[t] + np.asarray(params["theta_syn"]) + filtered + raw_ancest
        out[t] = 1.0 / (1.0 + np.exp(-x_in)) * np.asarray(params["W_sub"])
    return out + float(params["V_o"][0])


if __name__ == "__main__":
    sub_no, syn_basis_no, T_hist, T_data = 4, 3, 16, 300

    key = jax.random.PRNGKey(0)
    k1, k2, k3, k4 = jax.random.split(key, 4)
    # C_den: dendritic-tree adjacency (binary)
    C_den = (jax.random.uniform(k1, (sub_no, sub_no)) > 0.5).astype(jnp.float32)
    S_conv = jax.random.normal(k2, (T_data, sub_no), jnp.float32)
    Y_ancest = jax.random.normal(k3, (T_data, sub_no), jnp.float32)
    Z_ancest = jax.random.normal(k4, (T_data, sub_no), jnp.float32)

    # parameters exactly as in Root_Integ.__init__
    params = dict(
        V_o=jnp.ones((1,), jnp.float32) * -69.0,
        W_sub=jnp.ones((sub_no,), jnp.float32) * 0.25,
        theta_syn=jnp.zeros((sub_no,), jnp.float32),
        K_spike=jnp.ones((sub_no, syn_basis_no), jnp.float32) * 0.01,
        tau_spike=jnp.arange(1.6, 1.6 + syn_basis_no, dtype=jnp.float32),
        delta_spike=jnp.zeros((sub_no,), jnp.float32),
    )

    ref = reference_numpy(S_conv, Y_ancest, Z_ancest, C_den, params, T_hist)

    # block_t=128  : multiple grid steps -> exercises cross-block + within-block
    #                fold halos and the tail padding.
    # block_t=8192 : default big-tile path (clamped to the data) -> single block,
    #                halo from the trailing zero block.
    for bt in (128, 8192):
        run = jax.jit(functools.partial(root_integ_forward, T_hist=T_hist,
                                        block_t=bt))
        out = jax.block_until_ready(run(S_conv, Y_ancest, Z_ancest, C_den, params))
        assert out.shape == (T_data, sub_no)
        err = np.max(np.abs(np.asarray(out) - ref))
        assert np.allclose(np.asarray(out), ref, rtol=1e-4, atol=1e-4), (
            f"block_t={bt}: max abs err = {err}")
    print("KERNEL_OK")
</pallas_src>

<mosaic_0001>
module attributes {stable_mosaic.version = 11 : i64} {
  func.func @root_integ_kernel(%arg0: i32, %arg1: memref<8x128xf32, #tpu.memory_space<vmem>>, %arg2: memref<8x128xf32, #tpu.memory_space<vmem>>, %arg3: memref<8x128xf32, #tpu.memory_space<vmem>>, %arg4: memref<8x128xf32, #tpu.memory_space<vmem>>, %arg5: memref<8x11xf32, #tpu.memory_space<vmem>>, %arg6: memref<8x128xf32, #tpu.memory_space<vmem>>, %arg7: memref<8x128xf32, #tpu.memory_space<vmem>>) attributes {dimension_semantics = [#tpu.dimension_semantics<parallel>], iteration_bounds = array<i64: 2>, scalar_prefetch = 0 : i64, scratch_operands = 0 : i64, tpu.core_type = #tpu.core_type<tc>, window_params = [{transform_indices = @transform_0, window_bounds = array<i64: 8, 128>}, {transform_indices = @transform_1, window_bounds = array<i64: 8, 128>}, {transform_indices = @transform_2, window_bounds = array<i64: 8, 128>}, {transform_indices = @transform_3, window_bounds = array<i64: 8, 128>}, {pipeline_mode = #tpu.pipeline_mode<synchronous>, transform_indices = @transform_4, window_bounds = array<i64: 8, 11>}, {pipeline_mode = #tpu.pipeline_mode<synchronous>, transform_indices = @transform_5, window_bounds = array<i64: 8, 128>}, {transform_indices = @transform_6, window_bounds = array<i64: 8, 128>}]} {
    %c0 = arith.constant 0 : index
    %c0_0 = arith.constant 0 : index
    %0 = vector.load %arg5[%c0, %c0_0] : memref<8x11xf32, #tpu.memory_space<vmem>>, vector<8x11xf32>
    %1 = vector.extract_strided_slice %0 {offsets = [0, 8], sizes = [8, 1], strides = [1, 1]} : vector<8x11xf32> to vector<8x1xf32>
    %2 = vector.extract_strided_slice %0 {offsets = [0, 9], sizes = [8, 1], strides = [1, 1]} : vector<8x11xf32> to vector<8x1xf32>
    %3 = vector.extract_strided_slice %0 {offsets = [0, 10], sizes = [8, 1], strides = [1, 1]} : vector<8x11xf32> to vector<8x1xf32>
    %c0_1 = arith.constant 0 : index
    %c0_2 = arith.constant 0 : index
    %4 = vector.load %arg6[%c0_1, %c0_2] : memref<8x128xf32, #tpu.memory_space<vmem>>, vector<8x128xf32>
    %c0_3 = arith.constant 0 : index
    %c0_4 = arith.constant 0 : index
    %5 = vector.load %arg3[%c0_3, %c0_4] : memref<8x128xf32, #tpu.memory_space<vmem>>, vector<8x128xf32>
    %6 = vector.extract_strided_slice %5 {offsets = [4, 0], sizes = [4, 128], strides = [1, 1]} : vector<8x128xf32> to vector<4x128xf32>
    %c0_5 = arith.constant 0 : index
    %c0_6 = arith.constant 0 : index
    %7 = vector.load %arg4[%c0_5, %c0_6] : memref<8x128xf32, #tpu.memory_space<vmem>>, vector<4x128xf32>
    %8 = tpu.concatenate %6, %7 in 0 : vector<4x128xf32>, vector<4x128xf32> -> vector<8x128xf32>
    %9 = tpu.concatenate %5, %8 in 1 : vector<8x128xf32>, vector<8x128xf32> -> vector<8x256xf32>
    %c0_7 = arith.constant 0 : index
    %c0_8 = arith.constant 0 : index
    %10 = vector.load %arg2[%c0_7, %c0_8] : memref<8x128xf32, #tpu.memory_space<vmem>>, vector<8x128xf32>
    %cst = arith.constant 0.000000e+00 : f32
    %11 = vector.broadcast %cst : f32 to vector<8x128xf32>
    %cst_9 = arith.constant 0.000000e+00 : f32
    %12 = vector.broadcast %cst_9 : f32 to vector<8x256xf32>
    %13 = vector.extract_strided_slice %0 {offsets = [0, 0], sizes = [8, 1], strides = [1, 1]} : vector<8x11xf32> to vector<8x1xf32>
    %14 = vector.extract_strided_slice %10 {offsets = [0, 0], sizes = [1, 128], strides = [1, 1]} : vector<8x128xf32> to vector<1x128xf32>
    %15 = vector.broadcast %13 : vector<8x1xf32> to vector<8x128xf32>
    %16 = vector.broadcast %14 : vector<1x128xf32> to vector<8x128xf32>
    %17 = arith.mulf %15, %16 : vector<8x128xf32>
    %18 = arith.addf %11, %17 : vector<8x128xf32>
    %19 = vector.extract_strided_slice %9 {offsets = [0, 0], sizes = [1, 256], strides = [1, 1]} : vector<8x256xf32> to vector<1x256xf32>
    %20 = vector.broadcast %13 : vector<8x1xf32> to vector<8x256xf32>
    %21 = vector.broadcast %19 : vector<1x256xf32> to vector<8x256xf32>
    %22 = arith.mulf %20, %21 : vector<8x256xf32>
    %23 = arith.addf %12, %22 : vector<8x256xf32>
    %24 = vector.extract_strided_slice %0 {offsets = [0, 1], sizes = [8, 1], strides = [1, 1]} : vector<8x11xf32> to vector<8x1xf32>
    %25 = vector.extract_strided_slice %10 {offsets = [1, 0], sizes = [1, 128], strides = [1, 1]} : vector<8x128xf32> to vector<1x128xf32>
    %26 = vector.broadcast %24 : vector<8x1xf32> to vector<8x128xf32>
    %27 = vector.broadcast %25 : vector<1x128xf32> to vector<8x128xf32>
    %28 = arith.mulf %26, %27 : vector<8x128xf32>
    %29 = arith.addf %18, %28 : vector<8x128xf32>
    %30 = vector.extract_strided_slice %9 {offsets = [1, 0], sizes = [1, 256], strides = [1, 1]} : vector<8x256xf32> to vector<1x256xf32>
    %31 = vector.broadcast %24 : vector<8x1xf32> to vector<8x256xf32>
    %32 = vector.broadcast %30 : vector<1x256xf32> to vector<8x256xf32>
    %33 = arith.mulf %31, %32 : vector<8x256xf32>
    %34 = arith.addf %23, %33 : vector<8x256xf32>
    %35 = vector.extract_strided_slice %0 {offsets = [0, 2], sizes = [8, 1], strides = [1, 1]} : vector<8x11xf32> to vector<8x1xf32>
    %36 = vector.extract_strided_slice %10 {offsets = [2, 0], sizes = [1, 128], strides = [1, 1]} : vector<8x128xf32> to vector<1x128xf32>
    %37 = vector.broadcast %35 : vector<8x1xf32> to vector<8x128xf32>
    %38 = vector.broadcast %36 : vector<1x128xf32> to vector<8x128xf32>
    %39 = arith.mulf %37, %38 : vector<8x128xf32>
    %40 = arith.addf %29, %39 : vector<8x128xf32>
    %41 = vector.extract_strided_slice %9 {offsets = [2, 0], sizes = [1, 256], strides = [1, 1]} : vector<8x256xf32> to vector<1x256xf32>
    %42 = vector.broadcast %35 : vector<8x1xf32> to vector<8x256xf32>
    %43 = vector.broadcast %41 : vector<1x256xf32> to vector<8x256xf32>
    %44 = arith.mulf %42, %43 : vector<8x256xf32>
    %45 = arith.addf %34, %44 : vector<8x256xf32>
    %46 = vector.extract_strided_slice %0 {offsets = [0, 3], sizes = [8, 1], strides = [1, 1]} : vector<8x11xf32> to vector<8x1xf32>
    %47 = vector.extract_strided_slice %10 {offsets = [3, 0], sizes = [1, 128], strides = [1, 1]} : vector<8x128xf32> to vector<1x128xf32>
    %48 = vector.broadcast %46 : vector<8x1xf32> to vector<8x128xf32>
    %49 = vector.broadcast %47 : vector<1x128xf32> to vector<8x128xf32>
    %50 = arith.mulf %48, %49 : vector<8x128xf32>
    %51 = arith.addf %40, %50 : vector<8x128xf32>
    %52 = vector.extract_strided_slice %9 {offsets = [3, 0], sizes = [1, 256], strides = [1, 1]} : vector<8x256xf32> to vector<1x256xf32>
    %53 = vector.broadcast %46 : vector<8x1xf32> to vector<8x256xf32>
    %54 = vector.broadcast %52 : vector<1x256xf32> to vector<8x256xf32>
    %55 = arith.mulf %53, %54 : vector<8x256xf32>
    %56 = arith.addf %45, %55 : vector<8x256xf32>
    %57 = vector.extract_strided_slice %0 {offsets = [0, 4], sizes = [8, 1], strides = [1, 1]} : vector<8x11xf32> to vector<8x1xf32>
    %58 = vector.extract_strided_slice %10 {offsets = [4, 0], sizes = [1, 128], strides = [1, 1]} : vector<8x128xf32> to vector<1x128xf32>
    %59 = vector.broadcast %57 : vector<8x1xf32> to vector<8x128xf32>
    %60 = vector.broadcast %58 : vector<1x128xf32> to vector<8x128xf32>
    %61 = arith.mulf %59, %60 : vector<8x128xf32>
    %62 = arith.addf %51, %61 : vector<8x128xf32>
    %63 = vector.extract_strided_slice %9 {offsets = [4, 0], sizes = [1, 256], strides = [1, 1]} : vector<8x256xf32> to vector<1x256xf32>
    %64 = vector.broadcast %57 : vector<8x1xf32> to vector<8x256xf32>
    %65 = vector.broadcast %63 : vector<1x256xf32> to vector<8x256xf32>
    %66 = arith.mulf %64, %65 : vector<8x256xf32>
    %67 = arith.addf %56, %66 : vector<8x256xf32>
    %68 = vector.extract_strided_slice %0 {offsets = [0, 5], sizes = [8, 1], strides = [1, 1]} : vector<8x11xf32> to vector<8x1xf32>
    %69 = vector.extract_strided_slice %10 {offsets = [5, 0], sizes = [1, 128], strides = [1, 1]} : vector<8x128xf32> to vector<1x128xf32>
    %70 = vector.broadcast %68 : vector<8x1xf32> to vector<8x128xf32>
    %71 = vector.broadcast %69 : vector<1x128xf32> to vector<8x128xf32>
    %72 = arith.mulf %70, %71 : vector<8x128xf32>
    %73 = arith.addf %62, %72 : vector<8x128xf32>
    %74 = vector.extract_strided_slice %9 {offsets = [5, 0], sizes = [1, 256], strides = [1, 1]} : vector<8x256xf32> to vector<1x256xf32>
    %75 = vector.broadcast %68 : vector<8x1xf32> to vector<8x256xf32>
    %76 = vector.broadcast %74 : vector<1x256xf32> to vector<8x256xf32>
    %77 = arith.mulf %75, %76 : vector<8x256xf32>
    %78 = arith.addf %67, %77 : vector<8x256xf32>
    %79 = vector.extract_strided_slice %0 {offsets = [0, 6], sizes = [8, 1], strides = [1, 1]} : vector<8x11xf32> to vector<8x1xf32>
    %80 = vector.extract_strided_slice %10 {offsets = [6, 0], sizes = [1, 128], strides = [1, 1]} : vector<8x128xf32> to vector<1x128xf32>
    %81 = vector.broadcast %79 : vector<8x1xf32> to vector<8x128xf32>
    %82 = vector.broadcast %80 : vector<1x128xf32> to vector<8x128xf32>
    %83 = arith.mulf %81, %82 : vector<8x128xf32>
    %84 = arith.addf %73, %83 : vector<8x128xf32>
    %85 = vector.extract_strided_slice %9 {offsets = [6, 0], sizes = [1, 256], strides = [1, 1]} : vector<8x256xf32> to vector<1x256xf32>
    %86 = vector.broadcast %79 : vector<8x1xf32> to vector<8x256xf32>
    %87 = vector.broadcast %85 : vector<1x256xf32> to vector<8x256xf32>
    %88 = arith.mulf %86, %87 : vector<8x256xf32>
    %89 = arith.addf %78, %88 : vector<8x256xf32>
    %90 = vector.extract_strided_slice %0 {offsets = [0, 7], sizes = [8, 1], strides = [1, 1]} : vector<8x11xf32> to vector<8x1xf32>
    %91 = vector.extract_strided_slice %10 {offsets = [7, 0], sizes = [1, 128], strides = [1, 1]} : vector<8x128xf32> to vector<1x128xf32>
    %92 = vector.broadcast %90 : vector<8x1xf32> to vector<8x128xf32>
    %93 = vector.broadcast %91 : vector<1x128xf32> to vector<8x128xf32>
    %94 = arith.mulf %92, %93 : vector<8x128xf32>
    %95 = arith.addf %84, %94 : vector<8x128xf32>
    %96 = vector.extract_strided_slice %9 {offsets = [7, 0], sizes = [1, 256], strides = [1, 1]} : vector<8x256xf32> to vector<1x256xf32>
    %97 = vector.broadcast %90 : vector<8x1xf32> to vector<8x256xf32>
    %98 = vector.broadcast %96 : vector<1x256xf32> to vector<8x256xf32>
    %99 = arith.mulf %97, %98 : vector<8x256xf32>
    %100 = arith.addf %89, %99 : vector<8x256xf32>
    %cst_10 = arith.constant 0.000000e+00 : f32
    %101 = vector.broadcast %cst_10 : f32 to vector<8x256xf32>
    %102 = vector.extract_strided_slice %4 {offsets = [0, 0], sizes = [8, 1], strides = [1, 1]} : vector<8x128xf32> to vector<8x1xf32>
    %103 = vector.broadcast %102 : vector<8x1xf32> to vector<8x256xf32>
    %104 = arith.mulf %100, %103 : vector<8x256xf32>
    %105 = arith.addf %101, %104 : vector<8x256xf32>
    %c255_i32 = arith.constant 255 : i32
    %106 = tpu.dynamic_rotate %100 by %c255_i32 dim 1 : vector<8x256xf32>, i32 -> vector<8x256xf32>
    %107 = vector.extract_strided_slice %4 {offsets = [0, 1], sizes = [8, 1], strides = [1, 1]} : vector<8x128xf32> to vector<8x1xf32>
    %108 = vector.broadcast %107 : vector<8x1xf32> to vector<8x256xf32>
    %109 = arith.mulf %106, %108 : vector<8x256xf32>
    %110 = arith.addf %105, %109 : vector<8x256xf32>
    %c254_i32 = arith.constant 254 : i32
    %111 = tpu.dynamic_rotate %100 by %c254_i32 dim 1 : vector<8x256xf32>, i32 -> vector<8x256xf32>
    %112 = vector.extract_strided_slice %4 {offsets = [0, 2], sizes = [8, 1], strides = [1, 1]} : vector<8x128xf32> to vector<8x1xf32>
    %113 = vector.broadcast %112 : vector<8x1xf32> to vector<8x256xf32>
    %114 = arith.mulf %111, %113 : vector<8x256xf32>
    %115 = arith.addf %110, %114 : vector<8x256xf32>
    %c253_i32 = arith.constant 253 : i32
    %116 = tpu.dynamic_rotate %100 by %c253_i32 dim 1 : vector<8x256xf32>, i32 -> vector<8x256xf32>
    %117 = vector.extract_strided_slice %4 {offsets = [0, 3], sizes = [8, 1], strides = [1, 1]} : vector<8x128xf32> to vector<8x1xf32>
    %118 = vector.broadcast %117 : vector<8x1xf32> to vector<8x256xf32>
    %119 = arith.mulf %116, %118 : vector<8x256xf32>
    %120 = arith.addf %115, %119 : vector<8x256xf32>
    %c252_i32 = arith.constant 252 : i32
    %121 = tpu.dynamic_rotate %100 by %c252_i32 dim 1 : vector<8x256xf32>, i32 -> vector<8x256xf32>
    %122 = vector.extract_strided_slice %4 {offsets = [0, 4], sizes = [8, 1], strides = [1, 1]} : vector<8x128xf32> to vector<8x1xf32>
    %123 = vector.broadcast %122 : vector<8x1xf32> to vector<8x256xf32>
    %124 = arith.mulf %121, %123 : vector<8x256xf32>
    %125 = arith.addf %120, %124 : vector<8x256xf32>
    %c251_i32 = arith.constant 251 : i32
    %126 = tpu.dynamic_rotate %100 by %c251_i32 dim 1 : vector<8x256xf32>, i32 -> vector<8x256xf32>
    %127 = vector.extract_strided_slice %4 {offsets = [0, 5], sizes = [8, 1], strides = [1, 1]} : vector<8x128xf32> to vector<8x1xf32>
    %128 = vector.broadcast %127 : vector<8x1xf32> to vector<8x256xf32>
    %129 = arith.mulf %126, %128 : vector<8x256xf32>
    %130 = arith.addf %125, %129 : vector<8x256xf32>
    %c250_i32 = arith.constant 250 : i32
    %131 = tpu.dynamic_rotate %100 by %c250_i32 dim 1 : vector<8x256xf32>, i32 -> vector<8x256xf32>
    %132 = vector.extract_strided_slice %4 {offsets = [0, 6], sizes = [8, 1], strides = [1, 1]} : vector<8x128xf32> to vector<8x1xf32>
    %133 = vector.broadcast %132 : vector<8x1xf32> to vector<8x256xf32>
    %134 = arith.mulf %131, %133 : vector<8x256xf32>
    %135 = arith.addf %130, %134 : vector<8x256xf32>
    %c249_i32 = arith.constant 249 : i32
    %136 = tpu.dynamic_rotate %100 by %c249_i32 dim 1 : vector<8x256xf32>, i32 -> vector<8x256xf32>
    %137 = vector.extract_strided_slice %4 {offsets = [0, 7], sizes = [8, 1], strides = [1, 1]} : vector<8x128xf32> to vector<8x1xf32>
    %138 = vector.broadcast %137 : vector<8x1xf32> to vector<8x256xf32>
    %139 = arith.mulf %136, %138 : vector<8x256xf32>
    %140 = arith.addf %135, %139 : vector<8x256xf32>
    %c248_i32 = arith.constant 248 : i32
    %141 = tpu.dynamic_rotate %100 by %c248_i32 dim 1 : vector<8x256xf32>, i32 -> vector<8x256xf32>
    %142 = vector.extract_strided_slice %4 {offsets = [0, 8], sizes = [8, 1], strides = [1, 1]} : vector<8x128xf32> to vector<8x1xf32>
    %143 = vector.broadcast %142 : vector<8x1xf32> to vector<8x256xf32>
    %144 = arith.mulf %141, %143 : vector<8x256xf32>
    %145 = arith.addf %140, %144 : vector<8x256xf32>
    %c247_i32 = arith.constant 247 : i32
    %146 = tpu.dynamic_rotate %100 by %c247_i32 dim 1 : vector<8x256xf32>, i32 -> vector<8x256xf32>
    %147 = vector.extract_strided_slice %4 {offsets = [0, 9], sizes = [8, 1], strides = [1, 1]} : vector<8x128xf32> to vector<8x1xf32>
    %148 = vector.broadcast %147 : vector<8x1xf32> to vector<8x256xf32>
    %149 = arith.mulf %146, %148 : vector<8x256xf32>
    %150 = arith.addf %145, %149 : vector<8x256xf32>
    %c246_i32 = arith.constant 246 : i32
    %151 = tpu.dynamic_rotate %100 by %c246_i32 dim 1 : vector<8x256xf32>, i32 -> vector<8x256xf32>
    %152 = vector.extract_strided_slice %4 {offsets = [0, 10], sizes = [8, 1], strides = [1, 1]} : vector<8x128xf32> to vector<8x1xf32>
    %153 = vector.broadcast %152 : vector<8x1xf32> to vector<8x256xf32>
    %154 = arith.mulf %151, %153 : vector<8x256xf32>
    %155 = arith.addf %150, %154 : vector<8x256xf32>
    %c245_i32 = arith.constant 245 : i32
    %156 = tpu.dynamic_rotate %100 by %c245_i32 dim 1 : vector<8x256xf32>, i32 -> vector<8x256xf32>
    %157 = vector.extract_strided_slice %4 {offsets = [0, 11], sizes = [8, 1], strides = [1, 1]} : vector<8x128xf32> to vector<8x1xf32>
    %158 = vector.broadcast %157 : vector<8x1xf32> to vector<8x256xf32>
    %159 = arith.mulf %156, %158 : vector<8x256xf32>
    %160 = arith.addf %155, %159 : vector<8x256xf32>
    %c244_i32 = arith.constant 244 : i32
    %161 = tpu.dynamic_rotate %100 by %c244_i32 dim 1 : vector<8x256xf32>, i32 -> vector<8x256xf32>
    %162 = vector.extract_strided_slice %4 {offsets = [0, 12], sizes = [8, 1], strides = [1, 1]} : vector<8x128xf32> to vector<8x1xf32>
    %163 = vector.broadcast %162 : vector<8x1xf32> to vector<8x256xf32>
    %164 = arith.mulf %161, %163 : vector<8x256xf32>
    %165 = arith.addf %160, %164 : vector<8x256xf32>
    %c243_i32 = arith.constant 243 : i32
    %166 = tpu.dynamic_rotate %100 by %c243_i32 dim 1 : vector<8x256xf32>, i32 -> vector<8x256xf32>
    %167 = vector.extract_strided_slice %4 {offsets = [0, 13], sizes = [8, 1], strides = [1, 1]} : vector<8x128xf32> to vector<8x1xf32>
    %168 = vector.broadcast %167 : vector<8x1xf32> to vector<8x256xf32>
    %169 = arith.mulf %166, %168 : vector<8x256xf32>
    %170 = arith.addf %165, %169 : vector<8x256xf32>
    %c242_i32 = arith.constant 242 : i32
    %171 = tpu.dynamic_rotate %100 by %c242_i32 dim 1 : vector<8x256xf32>, i32 -> vector<8x256xf32>
    %172 = vector.extract_strided_slice %4 {offsets = [0, 14], sizes = [8, 1], strides = [1, 1]} : vector<8x128xf32> to vector<8x1xf32>
    %173 = vector.broadcast %172 : vector<8x1xf32> to vector<8x256xf32>
    %174 = arith.mulf %171, %173 : vector<8x256xf32>
    %175 = arith.addf %170, %174 : vector<8x256xf32>
    %c241_i32 = arith.constant 241 : i32
    %176 = tpu.dynamic_rotate %100 by %c241_i32 dim 1 : vector<8x256xf32>, i32 -> vector<8x256xf32>
    %177 = vector.extract_strided_slice %4 {offsets = [0, 15], sizes = [8, 1], strides = [1, 1]} : vector<8x128xf32> to vector<8x1xf32>
    %178 = vector.broadcast %177 : vector<8x1xf32> to vector<8x256xf32>
    %179 = arith.mulf %176, %178 : vector<8x256xf32>
    %180 = arith.addf %175, %179 : vector<8x256xf32>
    %c0_11 = arith.constant 0 : index
    %c0_12 = arith.constant 0 : index
    %181 = vector.load %arg1[%c0_11, %c0_12] : memref<8x128xf32, #tpu.memory_space<vmem>>, vector<8x128xf32>
    %182 = vector.broadcast %1 : vector<8x1xf32> to vector<8x128xf32>
    %183 = arith.addf %181, %182 : vector<8x128xf32>
    %184 = vector.extract_strided_slice %180 {offsets = [0, 0], sizes = [8, 128], strides = [1, 1]} : vector<8x256xf32> to vector<8x128xf32>
    %185 = arith.addf %183, %184 : vector<8x128xf32>
    %186 = arith.addf %185, %95 : vector<8x128xf32>
    %cst_13 = arith.constant 0.000000e+00 : f32
    %187 = vector.broadcast %cst_13 : f32 to vector<8x128xf32>
    %188 = arith.subf %187, %186 : vector<8x128xf32>
    %189 = math.exp %188 : vector<8x128xf32>
    %cst_14 = arith.constant 1.000000e+00 : f32
    %190 = vector.broadcast %cst_14 : f32 to vector<8x128xf32>
    %191 = arith.addf %190, %189 : vector<8x128xf32>
    %192 = tpu.reciprocal %191 {approx = true} : vector<8x128xf32> -> vector<8x128xf32>
    %193 = vector.broadcast %2 : vector<8x1xf32> to vector<8x128xf32>
    %194 = arith.mulf %192, %193 : vector<8x128xf32>
    %195 = vector.broadcast %3 : vector<8x1xf32> to vector<8x128xf32>
    %196 = arith.addf %194, %195 : vector<8x128xf32>
    %c0_15 = arith.constant 0 : index
    %c0_16 = arith.constant 0 : index
    %197 = vector.load %arg7[%c0_15, %c0_16] : memref<8x128xf32, #tpu.memory_space<vmem>>, vector<8x128xf32>
    tpu.vector_store %arg7[%c0_15, %c0_16], %196 {strides = array<i32>} : memref<8x128xf32, #tpu.memory_space<vmem>>, vector<8x128xf32>,
    return
  }
  func.func @transform_0(%arg0: i32) -> (i32, i32) {
    %c0_i32 = arith.constant 0 : i32
    %c0_i32_0 = arith.constant 0 : i32
    return %c0_i32, %arg0 : i32, i32
  }
  func.func @transform_1(%arg0: i32) -> (i32, i32) {
    %c0_i32 = arith.constant 0 : i32
    %c0_i32_0 = arith.constant 0 : i32
    return %c0_i32, %arg0 : i32, i32
  }
  func.func @transform_2(%arg0: i32) -> (i32, i32) {
    %c0_i32 = arith.constant 0 : i32
    %c0_i32_0 = arith.constant 0 : i32
    return %c0_i32, %arg0 : i32, i32
  }
  func.func @transform_3(%arg0: i32) -> (i32, i32) {
    %c1_i32 = arith.constant 1 : i32
    %0 = arith.addi %arg0, %c1_i32 : i32
    %c1_i32_0 = arith.constant 1 : i32
    %1 = arith.muli %0, %c1_i32_0 : i32
    %c0_i32 = arith.constant 0 : i32
    %c0_i32_1 = arith.constant 0 : i32
    return %c0_i32, %1 : i32, i32
  }
  func.func @transform_4(%arg0: i32) -> (i32, i32) {
    %c0_i32 = arith.constant 0 : i32
    %c0_i32_0 = arith.constant 0 : i32
    %c0_i32_1 = arith.constant 0 : i32
    return %c0_i32, %c0_i32_0 : i32, i32
  }
  func.func @transform_5(%arg0: i32) -> (i32, i32) {
    %c0_i32 = arith.constant 0 : i32
    %c0_i32_0 = arith.constant 0 : i32
    %c0_i32_1 = arith.constant 0 : i32
    return %c0_i32, %c0_i32_0 : i32, i32
  }
  func.func @transform_6(%arg0: i32) -> (i32, i32) {
    %c0_i32 = arith.constant 0 : i32
    %c0_i32_0 = arith.constant 0 : i32
    return %c0_i32, %arg0 : i32, i32
  }
}

</mosaic_0001>

<bundles_post_ra>
// kernel: tile.18
= control target key start
LH: loop header
LB: loop body
LE: loop exit
PB: predicated region body
PF: predicated region fallthrough
CT: control target
= control target key end

     0   :  { %s22_s0 = inlined_call_operand.vmem [shape: f32[4], index: 0, kind: input, shape index: {}]   ;;  %s23_s1 = inlined_call_operand.vmem [shape: f32[2,4], index: 1, kind: output, shape index: {}]  }
   0x1   :  { %v4_v0 = vld [vmem:[%s22_s0] ss:$0 sm:$0xff] }
   0x2   :  { %5 = vst [vmem:[%s23_s1] sm:$0x3] %v4_v0 }

// kernel: tile.0
= control target key start
LH: loop header
LB: loop body
LE: loop exit
PB: predicated region body
PF: predicated region fallthrough
CT: control target
= control target key end

     0   :  { %s34_s8 = smov 125   ;;  %s35_s9 = smov 126   ;;  %vm7_vm0 = vcmask 7168   ;;  %s61_s0 = inlined_call_operand.vmem [shape: f32[2,4], index: 0, kind: input, shape index: {}]   ;;  %s62_s1 = inlined_call_operand.vmem [shape: f32[8,1], index: 1, kind: output, shape index: {}]  }
   0x1   :  { %v4_v0 = vld [vmem:[%s61_s0] sm:$0x3]  ;;  %s33_s0 = smov 127  }
   0x2   :  { %5 = vst [vmem:[#allocation0] sm:$0x3] %v4_v0 }
   0x9   :  { %v9_v1 = vld [vmem:[#allocation0] sm:$0x3]  }
   0xa   :  { %v21_v2 = vld [vmem:[#allocation0] sm:$0x3]   ;;  %10 = vrot.lane.b32.xlu0 %v9_v1, %s33_s0 }
   0xb   :  { %22 = vrot.lane.b32.xlu1 %v21_v2, %s34_s8  ;;  %v15_v3 = vld [vmem:[#allocation0] sm:$0x3]  }
   0xc   :  { %v6_v4 = vld [vmem:[#allocation0] sm:$0x3]  }
   0xd   :  { %8 = vst.msk [vmem:[%s62_s1] ss:$4 sm:$0x3] %vm7_vm0, %v6_v4  }
  0x12   :  { %16 = vrot.lane.b32.xlu0 %v15_v3, %s35_s9 }
  0x7c   :  { %v11_v5 = vpop.permute.xlu0 %10  }
  0x7d   :  { %v23_v6 = vpop.permute.xlu1 %22   ;;  %27 = vst.msk [vmem:[%s62_s1 + $0x1] ss:$4 sm:$0x3] %vm7_vm0, %v11_v5  }
  0x7e   :  { %29 = vst.msk [vmem:[%s62_s1 + $0x3] ss:$4 sm:$0x3] %vm7_vm0, %v23_v6  }
  0x84   :  { %v17_v7 = vpop.permute.xlu0 %16  }
  0x85   :  { %28 = vst.msk [vmem:[%s62_s1 + $0x2] ss:$4 sm:$0x3] %vm7_vm0, %v17_v7  }

// kernel: root_integ_forward.1
= control target key start
LH: loop header
LB: loop body
LE: loop exit
PB: predicated region body
PF: predicated region fallthrough
CT: control target
= control target key end

     0   :  { %s881_s21 = smov 0   ;;  %s1083_s0 = inlined_call_operand.vmem [shape: f32[8,256], index: 0, kind: input, shape index: {}]   ;;  %s1084_s1 = inlined_call_operand.vmem [shape: f32[8,256], index: 1, kind: input, shape index: {}]   ;;  %s1085_s2 = inlined_call_operand.vmem [shape: f32[8,384], index: 2, kind: input, shape index: {}, may-alias: {2,3}]   ;;  %s1086_s3 = inlined_call_operand.vmem [shape: f32[8,384], index: 3, kind: input, shape index: {}, may-alias: {2,3}]   ;;  %s1087_s4 = inlined_call_operand.vmem [shape: f32[8,11], index: 4, kind: input, shape index: {}]   ;;  %s1088_s5 = inlined_call_operand.vmem [shape: f32[8,128], index: 5, kind: input, shape index: {}]   ;;  %s1089_s6 = inlined_call_operand.vmem [shape: f32[8,256], index: 6, kind: output, shape index: {}]  }
   0x1 LB: > { %s887_s22 = sadd.s32 4294967295, %s813_s21   ;;  %p729_p0 = scmp.ge.s32.totalorder %s813_s21, 1  ;;  %s813_s21 = sphi %s881_s21, %s16_s21  }
   0x2   : > { %p242_p1 = scmp.lt.s32.totalorder %s813_s21, 3 }
   0x4   : > { %p243_p2 = pnand %p729_p0, %p242_p1 }
   0x5   : > { %s295_s27 = sadd.s32 (!%p243_p2), 1, %s887_s22  ;;  %p291_p3 = scmp.lt.s32.totalorder (!%p243_p2), %s887_s22, 2 }
   0x6   : > { %246 = sbr.rel (%p243_p2) target bundleno = 406 (0x196), region = 44  ;;  %p296_p4 = scmp.lt.s32.totalorder (!%p243_p2), %s295_s27, 2 }
   0x7   : > { %p283_p5 = scmp.lt.s32.totalorder (!%p243_p2), %s887_s22, 1  ;;  %s827_s17 = smov (!%p243_p2), 127  }
   0x8   : > { %s828_s18 = smov (!%p243_p2), 126   ;;  %s829_s19 = smov (!%p243_p2), 125  }
   0x9   : > { %s830_s20 = smov (!%p243_p2), 124   ;;  %s832_s23 = smov (!%p243_p2), 122  }
   0xa   : > { %s833_s24 = smov (!%p243_p2), 121   ;;  %s835_s25 = smov (!%p243_p2), 120  }
   0xb   : > { %v894_v0 = vld [vmem:[%s1087_s4] sm:$0xff]  ;;  %v815_v1 = vmov 1   ;;  %v816_v2 = vmov 2   ;;  %v817_v3 = vmov 4   ;;  %v818_v4 = vmov 0   ;;  %s292_s28 = scalar_select %p291_p3, %s887_s22, 2 }
   0xc   : > { %776 = vset.pattern.permute.xlu0 %v815_v1  ;;  %778 = vset.pattern.permute.xlu1 %v816_v2  ;;  %v819_v5 = vmov 3   ;;  %v820_v6 = vmov 5   ;;  %v905_v7 = vld [vmem:[%s1088_s5] sm:$0xff]  ;;  %v821_v8 = vmov 6   ;;  %v822_v9 = vmov 7   ;;  %s1091_s27 = smov (!%p296_p4, %s295_s27), 2 }
   0xd   : > { %333 = vperm.xlu0 %776, %v894_v0   ;;  %346 = vperm.xlu1 %778, %v894_v0   ;;  %v823_v10 = vmov 8   ;;  %v824_v11 = vmov 9   ;;  %s732_s29 = sshll.u32 %s292_s28, 3  ;;  %s733_s30 = sshll.u32 %s1091_s27, 3  ;;  %v825_v12 = vmov 10   ;;  %vm315_vm0 = vcmask 1043456  }
   0xe   : > { %780 = vset.pattern.permute.xlu2 %v817_v3  ;;  %s1093_s22 = smov (!%p283_p5, %s887_s22), 1  ;;  %s294_s9 = scalar_lea.vmem %s1085_s2, %s732_s29  ;;  %v826_v21 = vmov 11  }
   0xf   : > { %372 = vperm.xlu2 %780, %v894_v0   ;;  %s299_s12 = scalar_lea.vmem %s1086_s3, %s733_s30  ;;  %s932_s13 = sshll.u32 %s1093_s22, 3  ;;  %v934_v13 = vld [vmem:[%s294_s9] sm:$0xff] }
  0x10   : > { %v308_v14 = vld [vmem:[%s299_s12] sm:$0xf]  ;;  %s290_s16 = scalar_lea.vmem %s1084_s1, %s932_s13  ;;  %v310_v16 = vrot.slane %v934_v13, 4  ;;  %v339_v24 = vperm.slane %v934_v13, 1  ;;  %v378_v26 = vperm.slane %v934_v13, 4  ;;  %v326_v29 = vperm.slane %v934_v13, 0  ;;  %s286_s11 = scalar_lea.vmem %s1083_s0, %s932_s13 }
  0x11   : > { %v313_v17 = vrot.slane %v308_v14, 4  ;;  %v941_v20 = vld [vmem:[%s290_s16] sm:$0xff]  ;;  %v352_v33 = vperm.slane %v934_v13, 2  ;;  %v365_v37 = vperm.slane %v934_v13, 3  ;;  %v391_v59 = vperm.slane %v934_v13, 5  ;;  %s831_s22 = smov 123   ;;  %s304_s15 = scalar_lea.vmem %s1089_s6, %s932_s13 }
  0x12   : > { %v336_v23 = vperm.slane %v941_v20, 1  ;;  %v375_v25 = vperm.slane %v941_v20, 4  ;;  %v323_v28 = vperm.slane %v941_v20, 0  ;;  %v349_v32 = vperm.slane %v941_v20, 2  ;;  %s837_s26 = smov 119   ;;  %s839_s27 = smov 118  }
  0x13   : > { %v943_v22 = vsel %vm315_vm0, %v310_v16, %v313_v17  ;;  %v362_v36 = vperm.slane %v941_v20, 3  ;;  %v388_v52 = vperm.slane %v941_v20, 5  ;;  %s841_s28 = smov 117   ;;  %s842_s29 = smov 116  }
  0x14   : > { %v340_v27 = vperm.slane %v943_v22, 1  ;;  %v327_v30 = vperm.slane %v943_v22, 0  ;;  %v379_v34 = vperm.slane %v943_v22, 4  ;;  %v353_v35 = vperm.slane %v943_v22, 2  ;;  %s843_s30 = smov 115   ;;  %s844_s7 = smov 114  }
  0x15   : > { %777 = vset.pattern.permute.xlu0 %v818_v4  ;;  %779 = vset.pattern.permute.xlu1 %v819_v5  ;;  %v366_v38 = vperm.slane %v943_v22, 3  ;;  %v392_v60 = vperm.slane %v943_v22, 5  ;;  %v405_v4 = vperm.slane %v943_v22, 6  ;;  %s845_s8 = smov 113  }
  0x16   : > { %320 = vperm.xlu0 %777, %v894_v0   ;;  %359 = vperm.xlu1 %779, %v894_v0  }
  0x17   : > { %781 = vset.pattern.permute.xlu2 %v820_v6 }
  0x18   : > { %385 = vperm.xlu2 %781, %v894_v0  }
  0x1e   : > { %425 = vperm.xlu0 %777, %v905_v7   ;;  %782 = vset.pattern.permute.xlu1 %v821_v8 }
  0x1f   : > { %398 = vperm.xlu1 %782, %v894_v0  }
  0x20   : > { %783 = vset.pattern.permute.xlu2 %v822_v9 }
  0x21   : > { %411 = vperm.xlu2 %783, %v894_v0  }
  0x26   : > { %800 = vset.pattern.permute.xlu0 %v824_v11 }
  0x27   : > { %784 = vset.pattern.permute.xlu1 %v815_v1 }
  0x28   : > { %439 = vperm.xlu1 %784, %v905_v7  }
  0x29   : > { %799 = vset.pattern.permute.xlu2 %v823_v10 }
  0x30   : > { %785 = vset.pattern.permute.xlu1 %v816_v2  ;;  %v401_v2 = vperm.slane %v941_v20, 6 }
  0x31   : > { %451 = vperm.xlu1 %785, %v905_v7  }
  0x39   : > { %786 = vset.pattern.permute.xlu1 %v819_v5  ;;  %v417_v5 = vperm.slane %v934_v13, 7 }
  0x3a   : > { %463 = vperm.xlu1 %786, %v905_v7  }
  0x42   : > { %787 = vset.pattern.permute.xlu1 %v817_v3  ;;  %v404_v3 = vperm.slane %v934_v13, 6 }
  0x43   : > { %475 = vperm.xlu1 %787, %v905_v7  }
  0x4b   : > { %788 = vset.pattern.permute.xlu1 %v820_v6 }
  0x4c   : > { %487 = vperm.xlu1 %788, %v905_v7  }
  0x54   : > { %789 = vset.pattern.permute.xlu1 %v821_v8 }
  0x55   : > { %499 = vperm.xlu1 %789, %v905_v7  }
  0x5d   : > { %790 = vset.pattern.permute.xlu1 %v822_v9 }
  0x5e   : > { %511 = vperm.xlu1 %790, %v905_v7  }
  0x66   : > { %791 = vset.pattern.permute.xlu1 %v823_v10 }
  0x67   : > { %523 = vperm.xlu1 %791, %v905_v7  }
  0x69   : > { %v373_v15 = vpop.permute.xlu2 %372 }
  0x6a   : > { %v376_v41 = vmul.f32 %v375_v25, %v373_v15  ;;  %v380_v42 = vmul.f32 %v378_v26, %v373_v15  ;;  %v381_v51 = vmul.f32 %v379_v34, %v373_v15 }
  0x6f   : > { %792 = vset.pattern.permute.xlu1 %v824_v11  ;;  %v418_v11 = vperm.slane %v943_v22, 7 }
  0x70   : > { %535 = vperm.xlu1 %792, %v905_v7  }
  0x72   : > { %v386_v31 = vpop.permute.xlu2 %385 }
  0x73   : > { %v389_v14 = vmul.f32 %v388_v52, %v386_v31  ;;  %v393_v15 = vmul.f32 %v391_v59, %v386_v31 }
  0x78   : > { %793 = vset.pattern.permute.xlu1 %v825_v12 }
  0x79   : > { %547 = vperm.xlu1 %793, %v905_v7  }
  0x7b   : > { %v968_v10 = vpop.permute.xlu2 %411 }
  0x7c   : > { %v419_v26 = vmul.f32 %v417_v5, %v968_v10 }
  0x7f   : > { %v334_v18 = vpop.permute.xlu0 %333  ;;  %v347_v19 = vpop.permute.xlu1 %346 }
  0x80   : > { %v337_v39 = vmul.f32 %v336_v23, %v334_v18  ;;  %v341_v40 = vmul.f32 %v339_v24, %v334_v18  ;;  %v342_v45 = vmul.f32 %v340_v27, %v334_v18  ;;  %v350_v49 = vmul.f32 %v349_v32, %v347_v19 }
  0x81   : > { %794 = vset.pattern.permute.xlu1 %v826_v21  ;;  %v354_v50 = vmul.f32 %v352_v33, %v347_v19  ;;  %v355_v53 = vmul.f32 %v353_v35, %v347_v19  ;;  %v394_v19 = vmul.f32 %v392_v60, %v386_v31 }
  0x82   : > { %559 = vperm.xlu1 %794, %v905_v7  }
  0x88   : > { %v321_v43 = vpop.permute.xlu0 %320  ;;  %v360_v44 = vpop.permute.xlu1 %359 }
  0x89   : > { %v324_v46 = vmul.f32 %v323_v28, %v321_v43  ;;  %v328_v47 = vmul.f32 %v326_v29, %v321_v43  ;;  %v329_v48 = vmul.f32 %v327_v30, %v321_v43  ;;  %v363_v57 = vmul.f32 %v362_v36, %v360_v44 }
  0x8a   : > { %v367_v58 = vmul.f32 %v365_v37, %v360_v44  ;;  %v368_v1 = vmul.f32 %v366_v38, %v360_v44  ;;  %v420_v29 = vmul.f32 %v418_v11, %v968_v10  ;;  %v834_v38 = vmov 12  }
  0x8b   : > { %v338_v54 = vadd.f32 %v337_v39, %v324_v46  ;;  %v343_v55 = vadd.f32 %v341_v40, %v328_v47  ;;  %v344_v56 = vadd.f32 %v342_v45, %v329_v48  ;;  %795 = vset.pattern.permute.xlu1 %v834_v38  ;;  %v836_v40 = vmov 13  }
  0x8c   : > { %v840_v44 = vmov 15  }
  0x8d   : > { %v351_v61 = vadd.f32 %v350_v49, %v338_v54  ;;  %v356_v62 = vadd.f32 %v354_v50, %v343_v55  ;;  %v357_v63 = vadd.f32 %v355_v53, %v344_v56  ;;  %v434_v50 = vlaneseq }
  0x8f   : > { %v364_v6 = vadd.f32 %v363_v57, %v351_v61  ;;  %v369_v8 = vadd.f32 %v367_v58, %v356_v62  ;;  %v370_v9 = vadd.f32 %v368_v1, %v357_v63  ;;  %v1036_v53 = vand.u32 127, %v434_v50 }
  0x91   : > { %v377_v16 = vadd.f32 %v376_v41, %v364_v6  ;;  %v382_v17 = vadd.f32 %v380_v42, %v369_v8  ;;  %v383_v18 = vadd.f32 %v381_v51, %v370_v9  ;;  %v399_v21 = vpop.permute.xlu1 %398  ;;  %v838_v42 = vmov 14   ;;  %v426_v51 = vpop.permute.xlu0 %425 }
  0x92   : > { %v402_v23 = vmul.f32 %v401_v2, %v399_v21  ;;  %v406_v24 = vmul.f32 %v404_v3, %v399_v21  ;;  %v407_v25 = vmul.f32 %v405_v4, %v399_v21  ;;  %vm436_vm1 = vcmp.lt.s32.totalorder %v1036_v53, 127 }
  0x93   : > { %v390_v13 = vadd.f32 %v389_v14, %v377_v16  ;;  %v395_v27 = vadd.f32 %v393_v15, %v382_v17  ;;  %v396_v28 = vadd.f32 %v394_v19, %v383_v18  ;;  %vm448_vm2 = vcmp.lt.s32.totalorder %v1036_v53, 126 }
  0x94   : > { %vm460_vm3 = vcmp.lt.s32.totalorder %v1036_v53, 125  ;;  %vm472_vm4 = vcmp.lt.s32.totalorder %v1036_v53, 124  ;;  %vm484_vm5 = vcmp.lt.s32.totalorder %v1036_v53, 123  ;;  %vm496_vm6 = vcmp.lt.s32.totalorder %v1036_v53, 122 }
  0x95   : > { %v973_v30 = vadd.f32 %v402_v23, %v390_v13  ;;  %v408_v22 = vadd.f32 %v406_v24, %v395_v27  ;;  %v409_v32 = vadd.f32 %v407_v25, %v396_v28  ;;  %vm508_vm7 = vcmp.lt.s32.totalorder %v1036_v53, 121 }
  0x96   : > { %vm520_vm8 = vcmp.lt.s32.totalorder %v1036_v53, 120  ;;  %vm532_vm9 = vcmp.lt.s32.totalorder %v1036_v53, 119  ;;  %vm544_vm10 = vcmp.lt.s32.totalorder %v1036_v53, 118  ;;  %vm556_vm11 = vcmp.lt.s32.totalorder %v1036_v53, 117 }
  0x97   : > { %v975_v33 = vadd.f32 %v419_v26, %v408_v22  ;;  %v977_v34 = vadd.f32 %v420_v29, %v409_v32  ;;  %vm568_vm12 = vcmp.lt.s32.totalorder %v1036_v53, 116  ;;  %vm580_vm13 = vcmp.lt.s32.totalorder %v1036_v53, 115 }
  0x98   : > { %vm592_vm14 = vcmp.lt.s32.totalorder %v1036_v53, 114  ;;  %vm604_vm15 = vcmp.lt.s32.totalorder %v1036_v53, 113 }
  0x99   : > { %430 = vrot.lane.b32.xlu1 %v975_v33, %s827_s17  ;;  %446 = vrot.lane.b32.xlu0 %v977_v34, %s828_s18  ;;  %v428_v59 = vmul.f32 %v426_v51, %v975_v33 }
  0x9a   : > { %432 = vrot.lane.b32.xlu2 %v977_v34, %s827_s17  ;;  %v982_v31 = vpop.permute.xlu1 %439 }
  0xa1   : > { %458 = vrot.lane.b32.xlu0 %v977_v34, %s829_s19  ;;  %571 = vperm.xlu1 %795, %v905_v7  }
  0xa2   : > { %444 = vrot.lane.b32.xlu2 %v975_v33, %s828_s18 }
  0xa3   : > { %v986_v35 = vpop.permute.xlu1 %451 }
  0xa9   : > { %470 = vrot.lane.b32.xlu0 %v977_v34, %s830_s20  ;;  %796 = vset.pattern.permute.xlu1 %v836_v40 }
  0xaa   : > { %456 = vrot.lane.b32.xlu2 %v975_v33, %s829_s19  ;;  %583 = vperm.xlu1 %796, %v905_v7  }
  0xac   : > { %v991_v36 = vpop.permute.xlu1 %463 }
  0xb1   : > { %482 = vrot.lane.b32.xlu0 %v977_v34, %s831_s22 }
  0xb2   : > { %468 = vrot.lane.b32.xlu2 %v975_v33, %s830_s20  ;;  %797 = vset.pattern.permute.xlu1 %v838_v42 }
  0xb3   : > { %595 = vperm.xlu1 %797, %v905_v7  }
  0xb5   : > { %v996_v37 = vpop.permute.xlu1 %475 }
  0xb9   : > { %494 = vrot.lane.b32.xlu0 %v977_v34, %s832_s23 }
  0xba   : > { %480 = vrot.lane.b32.xlu2 %v975_v33, %s831_s22 }
  0xbb   : > { %798 = vset.pattern.permute.xlu1 %v840_v44 }
  0xbc   : > { %607 = vperm.xlu1 %798, %v905_v7  }
  0xbe   : > { %v1001_v39 = vpop.permute.xlu1 %487 }
  0xc1   : > { %506 = vrot.lane.b32.xlu0 %v977_v34, %s833_s24 }
  0xc2   : > { %492 = vrot.lane.b32.xlu2 %v975_v33, %s832_s23 }
  0xc4   : > { %801 = vset.pattern.permute.xlu1 %v825_v12 }
  0xc5   : > { %631 = vperm.xlu1 %801, %v894_v0  }
  0xc7   : > { %v1006_v41 = vpop.permute.xlu1 %499 }
  0xc9   : > { %518 = vrot.lane.b32.xlu0 %v977_v34, %s835_s25 }
  0xca   : > { %504 = vrot.lane.b32.xlu2 %v975_v33, %s833_s24 }
  0xd0   : > { %v1012_v43 = vpop.permute.xlu1 %511 }
  0xd1   : > { %530 = vrot.lane.b32.xlu0 %v977_v34, %s837_s26 }
  0xd2   : > { %516 = vrot.lane.b32.xlu2 %v975_v33, %s835_s25 }
  0xd9   : > { %542 = vrot.lane.b32.xlu0 %v977_v34, %s839_s27  ;;  %v1018_v45 = vpop.permute.xlu1 %523 }
  0xda   : > { %528 = vrot.lane.b32.xlu2 %v975_v33, %s837_s26 }
  0xe1   : > { %554 = vrot.lane.b32.xlu0 %v977_v34, %s841_s28 }
  0xe2   : > { %540 = vrot.lane.b32.xlu2 %v975_v33, %s839_s27  ;;  %v1024_v46 = vpop.permute.xlu1 %535 }
  0xe9   : > { %566 = vrot.lane.b32.xlu0 %v977_v34, %s842_s29 }
  0xea   : > { %552 = vrot.lane.b32.xlu2 %v975_v33, %s841_s28 }
  0xeb   : > { %v1028_v47 = vpop.permute.xlu1 %547 }
  0xf1   : > { %578 = vrot.lane.b32.xlu0 %v977_v34, %s843_s30 }
  0xf2   : > { %564 = vrot.lane.b32.xlu2 %v975_v33, %s842_s29 }
  0xf4   : > { %v433_v7 = vpop.permute.xlu2 %432  ;;  %v1033_v49 = vpop.permute.xlu1 %559 }
  0xf9   : > { %590 = vrot.lane.b32.xlu0 %v977_v34, %s844_s7 }
  0xfa   : > { %576 = vrot.lane.b32.xlu2 %v975_v33, %s843_s30 }
  0xfc   : > { %v445_v48 = vpop.permute.xlu2 %444 }
 0x101   : > { %602 = vrot.lane.b32.xlu0 %v977_v34, %s845_s8 }
 0x102   : > { %588 = vrot.lane.b32.xlu2 %v975_v33, %s844_s7 }
 0x104   : > { %v457_v52 = vpop.permute.xlu2 %456 }
 0x109   : > { %626 = vperm.xlu0 %800, %v894_v0  }
 0x10a   : > { %600 = vrot.lane.b32.xlu2 %v975_v33, %s845_s8 }
 0x10b   : > { %v431_v54 = vpop.permute.xlu1 %430  ;;  %v447_v55 = vpop.permute.xlu0 %446 }
 0x10c   : > { %v437_v56 = vsel %vm436_vm1, %v431_v54, %v433_v7  ;;  %v449_v57 = vsel %vm448_vm2, %v445_v48, %v447_v55  ;;  %v469_v58 = vpop.permute.xlu2 %468 }
 0x10d   : > { %v442_v60 = vmul.f32 %v982_v31, %v437_v56  ;;  %v454_v62 = vmul.f32 %v986_v35, %v449_v57 }
 0x10f   : > { %v443_v61 = vadd.f32 %v442_v60, %v428_v59 }
 0x111   : > { %v455_v63 = vadd.f32 %v454_v62, %v443_v61  ;;  %802 = vset.pattern.permute.xlu0 %v825_v12 }
 0x112   : > { %614 = vperm.xlu2 %799, %v894_v0  }
 0x113   : > { %v459_v1 = vpop.permute.xlu0 %458  ;;  %v572_v22 = vpop.permute.xlu1 %571 }
 0x114   : > { %v461_v2 = vsel %vm460_vm3, %v457_v52, %v459_v1  ;;  %v481_v3 = vpop.permute.xlu2 %480 }
 0x115   : > { %v466_v4 = vmul.f32 %v991_v36, %v461_v2 }
 0x117   : > { %v467_v5 = vadd.f32 %v466_v4, %v455_v63  ;;  %v612_v4 = vld [vmem:[%s286_s11] sm:$0xff] }
 0x11b   : > { %v471_v6 = vpop.permute.xlu0 %470 }
 0x11c   : > { %v473_v8 = vsel %vm472_vm4, %v469_v58, %v471_v6  ;;  %v493_v9 = vpop.permute.xlu2 %492  ;;  %v584_v31 = vpop.permute.xlu1 %583 }
 0x11d   : > { %v478_v11 = vmul.f32 %v996_v37, %v473_v8 }
 0x11f   : > { %v479_v14 = vadd.f32 %v478_v11, %v467_v5 }
 0x123   : > { %v483_v15 = vpop.permute.xlu0 %482 }
 0x124   : > { %v485_v12 = vsel %vm484_vm5, %v481_v3, %v483_v15  ;;  %v505_v16 = vpop.permute.xlu2 %504 }
 0x125   : > { %v490_v0 = vmul.f32 %v1001_v39, %v485_v12  ;;  %v596_v52 = vpop.permute.xlu1 %595 }
 0x127   : > { %v491_v17 = vadd.f32 %v490_v0, %v479_v14 }
 0x12b   : > { %v495_v18 = vpop.permute.xlu0 %494 }
 0x12c   : > { %v517_v19 = vpop.permute.xlu2 %516  ;;  %v497_v34 = vsel %vm496_vm6, %v493_v9, %v495_v18 }
 0x12d   : > { %v502_v37 = vmul.f32 %v1006_v41, %v497_v34 }
 0x12f   : > { %v503_v44 = vadd.f32 %v502_v37, %v491_v17 }
 0x133   : > { %v507_v21 = vpop.permute.xlu0 %506 }
 0x134   : > { %v529_v23 = vpop.permute.xlu2 %528  ;;  %v509_v35 = vsel %vm508_vm7, %v505_v16, %v507_v21 }
 0x135   : > { %v514_v39 = vmul.f32 %v1012_v43, %v509_v35 }
 0x137   : > { %v515_v50 = vadd.f32 %v514_v39, %v503_v44 }
 0x13b   : > { %v519_v24 = vpop.permute.xlu0 %518 }
 0x13c   : > { %v541_v25 = vpop.permute.xlu2 %540  ;;  %v521_v38 = vsel %vm520_vm8, %v517_v19, %v519_v24 }
 0x13d   : > { %v526_v7 = vmul.f32 %v1018_v45, %v521_v38 }
 0x13f   : > { %v527_v54 = vadd.f32 %v526_v7, %v515_v50 }
 0x143   : > { %v531_v26 = vpop.permute.xlu0 %530 }
 0x144   : > { %v553_v13 = vpop.permute.xlu2 %552  ;;  %v533_v42 = vsel %vm532_vm9, %v529_v23, %v531_v26 }
 0x145   : > { %v538_v51 = vmul.f32 %v1024_v46, %v533_v42 }
 0x147   : > { %v539_v57 = vadd.f32 %v538_v51, %v527_v54 }
 0x14b   : > { %v543_v27 = vpop.permute.xlu0 %542 }
 0x14c   : > { %v565_v28 = vpop.permute.xlu2 %564  ;;  %v545_v48 = vsel %vm544_vm10, %v541_v25, %v543_v27 }
 0x14d   : > { %v550_v43 = vmul.f32 %v1028_v47, %v545_v48  ;;  %v414_v47 = vperm.slane %v941_v20, 7 }
 0x14f   : > { %v551_v46 = vadd.f32 %v550_v43, %v539_v57  ;;  %v415_v9 = vmul.f32 %v414_v47, %v968_v10 }
 0x151   : > { %v416_v16 = vadd.f32 %v415_v9, %v973_v30 }
 0x153   : > { %v555_v29 = vpop.permute.xlu0 %554 }
 0x154   : > { %v577_v32 = vpop.permute.xlu2 %576  ;;  %v557_v41 = vsel %vm556_vm11, %v553_v13, %v555_v29 }
 0x155   : > { %v562_v45 = vmul.f32 %v1033_v49, %v557_v41  ;;  %v608_v49 = vpop.permute.xlu1 %607 }
 0x157   : > { %v563_v62 = vadd.f32 %v562_v45, %v551_v46 }
 0x15b   : > { %v567_v33 = vpop.permute.xlu0 %566 }
 0x15c   : > { %v589_v36 = vpop.permute.xlu2 %588  ;;  %v569_v55 = vsel %vm568_vm12, %v565_v28, %v567_v33 }
 0x15d   : > { %v574_v60 = vmul.f32 %v572_v22, %v569_v55  ;;  %v632_v24 = vpop.permute.xlu1 %631 }
 0x15f   : > { %v575_v1 = vadd.f32 %v574_v60, %v563_v62 }
 0x163   : > { %v579_v40 = vpop.permute.xlu0 %578 }
 0x164   : > { %v601_v56 = vpop.permute.xlu2 %600  ;;  %v581_v59 = vsel %vm580_vm13, %v577_v32, %v579_v40 }
 0x165   : > { %v586_v63 = vmul.f32 %v584_v31, %v581_v59 }
 0x167   : > { %v587_v5 = vadd.f32 %v586_v63, %v575_v1 }
 0x16b   : > { %v591_v58 = vpop.permute.xlu0 %590 }
 0x16c   : > { %v593_v61 = vsel %vm592_vm14, %v589_v36, %v591_v58  ;;  %v615_v3 = vpop.permute.xlu2 %614 }
 0x16d   : > { %v598_v2 = vmul.f32 %v596_v52, %v593_v61  ;;  %v617_v15 = vadd.f32 %v615_v3, %v612_v4 }
 0x16f   : > { %v599_v11 = vadd.f32 %v598_v2, %v587_v5 }
 0x173   : > { %v603_v6 = vpop.permute.xlu0 %602 }
 0x174   : > { %v605_v8 = vsel %vm604_vm15, %v601_v56, %v603_v6 }
 0x175   : > { %v610_v14 = vmul.f32 %v608_v49, %v605_v8 }
 0x177   : > { %v611_v12 = vadd.f32 %v610_v14, %v599_v11 }
 0x179   : > { %v618_v20 = vadd.f32 %v617_v15, %v611_v12 }
 0x17b   : > { %v619_v0 = vadd.f32 %v618_v20, %v416_v16  ;;  %v627_v21 = vpop.permute.xlu0 %626 }
 0x17d   : > { %v620_v17 = vsub.f32 0.0, %v619_v0 }
 0x17f   : > { %v621_v18 = vmul.f32 1.442695, %v620_v17 }
 0x181   : > { %803 = vpow2.f32 %v621_v18 }
 0x187   : > { %v804_v53 = vpop.eup %803 }
 0x188   : > { %v623_v19 = vadd.f32 1.0, %v804_v53 }
 0x18a   : > { %805 = vrcp.f32 %v623_v19 }
 0x190   : > { %v806_v23 = vpop.eup %805 }
 0x191   : > { %v629_v25 = vmul.f32 %v806_v23, %v627_v21 }
 0x193   : > { %v634_v10 = vadd.f32 %v632_v24, %v629_v25 }
 0x195   : > { %635 = vst [vmem:[%s304_s15] sm:$0xff] %v634_v10 }
 0x196 PF: > { %s16_s21 = sadd.s32 1, %s813_s21  }
 0x197   : > { %p13_p6 = scmp.ge.s32.totalorder %s16_s21, 4  }
 0x199   :  { %15 = sbr.rel (!%p13_p6) target bundleno = 1 (0x1), region = 83 }

</bundles_post_ra>
